<compile_context>
chip_gen: v7x
topology: tpu7x:2x2x1
jax: 0.10.0
libtpu: 0.0.40
codegen_flags: <defaults>
</compile_context>

<pallas_src>
import jax
import jax.numpy as jnp
from jax.experimental import pallas as pl
from jax.experimental.pallas import tpu as pltpu


# ---------------------------------------------------------------------------
# Kernel
# ---------------------------------------------------------------------------
def _make_decoder_kernel(input_size, hidden_size, time_chunk, seq_len, seq_len_pad,
                         batch_block):
    I, H, Tc, Bb = input_size, hidden_size, time_chunk, batch_block
    need_guard = (seq_len_pad != seq_len)

    def kernel(x_ref, h0_ref, wb_ref, wx2_ref, b_ref, out_ref, st_ref):
        c = pl.program_id(1)                     # time-chunk index (sequential axis)

        @pl.when(c == 0)
        def _():
            st_ref[...] = h0_ref[...]            # init carried [h1, h2] per batch block

        # VMEM-resident operands, hoisted out of the timestep loop.
        w_big = wb_ref[...]                                      # (I+2H, 8H)
        w_x2 = wx2_ref[...]                                      # (H, 4H)
        b_big = jnp.broadcast_to(b_ref[0:1, :], (Bb, 8 * H))     # fused-matmul bias
        b_x2 = jnp.broadcast_to(b_ref[1:2, 0:4 * H], (Bb, 4 * H))

        h1 = st_ref[0]                                           # (Bb, H)
        h2 = st_ref[1]                                           # (Bb, H)

        outs = []
        for t in range(Tc):                      # static unroll (Tc is small)
            x_t = x_ref[t]                       # (Bb, I)
            lhs = jnp.concatenate([x_t, h1, h2], axis=-1)        # (Bb, I+2H)

            # One fused matmul produces [rz1 | gx1_n | gh1_n | proj | gh2_rz | gh2_n];
            # the x/h1 contributions to rz1 are summed by the matmul itself.
            big = jnp.dot(lhs, w_big, preferred_element_type=jnp.float32) + b_big

            # ---- GRU1 (PyTorch GRUCell semantics, gate order r,z,n) ----
            rz1 = jax.nn.sigmoid(big[:, 0:2 * H])
            r1, z1 = rz1[:, 0:H], rz1[:, H:2 * H]
            n1 = jnp.tanh(big[:, 2 * H:3 * H] + r1 * big[:, 3 * H:4 * H])
            h1_new = n1 + z1 * (h1 - n1)                         # == (1-z1)*n1 + z1*h1
            dec_out = big[:, 4 * H:5 * H] + h1_new               # attn_proj(x) + h1_new

            # ---- GRU2 (x-side matmul depends on dec_out, kept separate) ----
            gx2 = jnp.dot(dec_out, w_x2, preferred_element_type=jnp.float32) + b_x2
            rz2 = jax.nn.sigmoid(gx2[:, 0:2 * H] + big[:, 5 * H:7 * H])
            r2, z2 = rz2[:, 0:H], rz2[:, H:2 * H]
            n2 = jnp.tanh(gx2[:, 2 * H:3 * H] + r2 * big[:, 7 * H:8 * H])
            h2_new = n2 + z2 * (h2 - n2)
            out_t = dec_out + h2_new

            if need_guard:                       # mask padded tail steps (static choice)
                valid = (c * Tc + t) < seq_len
                h1 = jnp.where(valid, h1_new, h1)
                h2 = jnp.where(valid, h2_new, h2)
            else:
                h1, h2 = h1_new, h2_new
            outs.append(out_t)

        # One lane-dense full-block store per chunk (Tc*H lanes), one HBM DMA per chunk.
        out_ref[...] = jnp.concatenate(outs, axis=-1)
        st_ref[0] = h1
        st_ref[1] = h2

    return kernel


# ---------------------------------------------------------------------------
# Parameter packing
# ---------------------------------------------------------------------------
def pack_params(params, input_size, hidden_size):
    """Pack PyTorch-layout (transposed) params into the fused kernel slabs.

    Returns (w_big, w_x2, b_all):
      w_big : (I+2H, 8H) f32 block-structured weights for the fused matmul over [x|h1|h2];
              columns = [rz1 | gx1_n | gh1_n | proj | gh2_rz | gh2_n]
      w_x2  : (H, 4H)  f32 GRU2 x-side weights (padded to a 128-lane tile at H=32)
      b_all : (2, 8H)  f32; row 0 = fused-matmul bias, row 1[:4H] = GRU2 x-side bias
    """
    I, H = input_size, hidden_size
    f32 = jnp.float32
    zIH = jnp.zeros((I, H), f32)
    zHH = jnp.zeros((H, H), f32)

    w_ih1, w_hh1 = params["w_ih1_t"], params["w_hh1_t"]   # (I,3H), (H,3H)
    w_ih2, w_hh2 = params["w_ih2_t"], params["w_hh2_t"]   # (H,3H), (H,3H)
    w_proj = params["w_proj_t"]                            # (I,H)

    rows_x = jnp.concatenate(
        [w_ih1[:, 0:2 * H], w_ih1[:, 2 * H:3 * H], zIH, w_proj,
         jnp.zeros((I, 3 * H), f32)], axis=1)
    rows_h1 = jnp.concatenate(
        [w_hh1[:, 0:2 * H], zHH, w_hh1[:, 2 * H:3 * H],
         jnp.zeros((H, 4 * H), f32)], axis=1)
    rows_h2 = jnp.concatenate(
        [jnp.zeros((H, 5 * H), f32), w_hh2[:, 0:2 * H], w_hh2[:, 2 * H:3 * H]], axis=1)
    w_big = jnp.concatenate([rows_x, rows_h1, rows_h2], axis=0)      # (I+2H, 8H)

    w_x2 = jnp.concatenate([w_ih2, zHH], axis=1)                     # (H, 4H)

    b_big = jnp.concatenate(
        [params["b_ih1"][:, 0:2 * H] + params["b_hh1"][:, 0:2 * H],  # rz1
         params["b_ih1"][:, 2 * H:3 * H],                            # gx1_n
         params["b_hh1"][:, 2 * H:3 * H],                            # gh1_n
         params["b_proj"],                                           # proj
         params["b_hh2"][:, 0:2 * H],                                # gh2_rz
         params["b_hh2"][:, 2 * H:3 * H]], axis=1)                   # gh2_n
    b_x2 = jnp.concatenate([params["b_ih2"], jnp.zeros((1, H), f32)], axis=1)
    b_all = jnp.concatenate(
        [b_big, jnp.concatenate([b_x2, jnp.zeros((1, 4 * H), f32)], axis=1)], axis=0)

    return w_big.astype(f32), w_x2.astype(f32), b_all.astype(f32)


# ---------------------------------------------------------------------------
# Wrappers
# ---------------------------------------------------------------------------
def decoder_rnn_decode(x_seq, h1_0, h2_0, packed, *, time_chunk=8, batch_block=None):
    """Run the DecoderRNN over a whole sequence in ONE pallas_call.

    x_seq:(T,B,I)  h1_0,h2_0:(B,H)  packed = pack_params(...).
    Returns (out_seq:(T,B,H), h1_T:(B,H), h2_T:(B,H)).
    """
    T, B, I = x_seq.shape
    H = h1_0.shape[1]
    w_big, w_x2, b_all = packed

    Tc = max(1, min(int(time_chunk), T))
    NC = -(-T // Tc)
    T_pad = NC * Tc
    Bb = B if batch_block is None else int(batch_block)
    if Bb != B:
        assert B % Bb == 0 and Bb % 8 == 0, "batch_block must divide B and be a multiple of 8"
    NB = B // Bb

    x_f32 = x_seq.astype(jnp.float32)
    if T_pad != T:
        x_f32 = jnp.concatenate(
            [x_f32, jnp.zeros((T_pad - T, B, I), jnp.float32)], axis=0)
    h12_0 = jnp.stack([h1_0, h2_0], axis=0).astype(jnp.float32)      # (2, B, H)

    kernel = _make_decoder_kernel(I, H, Tc, T, T_pad, Bb)

    flops = 2 * T * B * ((I + 2 * H) * 8 * H + H * 4 * H)            # 2 matmuls / step
    transcendentals = 6 * T * B * H                                  # 2x (sigmoid 2H + tanh H)
    bytes_accessed = 4 * (w_big.size + w_x2.size + b_all.size
                          + x_f32.size + B * T_pad * H + 3 * 2 * B * H)

    out2d, state = pl.pallas_call(
        kernel,
        out_shape=(
            jax.ShapeDtypeStruct((B, T_pad * H), jnp.float32),       # outputs (lane-dense)
            jax.ShapeDtypeStruct((2, B, H), jnp.float32),            # final [h1, h2]
        ),
        grid_spec=pltpu.PrefetchScalarGridSpec(
            num_scalar_prefetch=0,
            grid=(NB, NC),                                           # (batch blocks, time chunks)
            in_specs=[
                pl.BlockSpec((Tc, Bb, I), lambda b, c: (c, b, 0)),       # x chunk
                pl.BlockSpec((2, Bb, H), lambda b, c: (0, b, 0)),        # initial state
                pl.BlockSpec((I + 2 * H, 8 * H), lambda b, c: (0, 0)),   # fused weights (resident)
                pl.BlockSpec((H, 4 * H), lambda b, c: (0, 0)),           # GRU2 x-side weights
                pl.BlockSpec((2, 8 * H), lambda b, c: (0, 0)),           # biases
            ],
            out_specs=[
                pl.BlockSpec((Bb, Tc * H), lambda b, c: (b, c)),         # chunked outputs
                pl.BlockSpec((2, Bb, H), lambda b, c: (0, b, 0)),        # carried state (resident)
            ],
        ),
        compiler_params=pltpu.CompilerParams(
            dimension_semantics=("parallel", "arbitrary"),
            vmem_limit_bytes=32 * 1024 * 1024),
        cost_estimate=pl.CostEstimate(
            flops=flops, transcendentals=transcendentals,
            bytes_accessed=bytes_accessed),
    )(x_f32, h12_0, w_big, w_x2, b_all)

    out_seq = out2d.reshape(B, T_pad, H).transpose(1, 0, 2)[:T]
    return out_seq, state[0], state[1]


def decoder_rnn_forward(x, h1, h2, packed):
    """Single-step forward matching the PyTorch module (T == 1 case)."""
    out_seq, h1n, h2n = decoder_rnn_decode(x[None], h1, h2, packed, time_chunk=1)
    return out_seq[0], h1n, h2n


# ---------------------------------------------------------------------------
# Pure-JAX references
# ---------------------------------------------------------------------------
def reference_forward(x, h1, h2, params):
    H = h1.shape[1]

    def gru(x_, h_, w_ih_t, w_hh_t, b_ih, b_hh):
        gi = x_ @ w_ih_t + b_ih
        gh = h_ @ w_hh_t + b_hh
        r = jax.nn.sigmoid(gi[:, :H] + gh[:, :H])
        z = jax.nn.sigmoid(gi[:, H:2 * H] + gh[:, H:2 * H])
        n = jnp.tanh(gi[:, 2 * H:] + r * gh[:, 2 * H:])
        return (1.0 - z) * n + z * h_

    h1n = gru(x, h1, params["w_ih1_t"], params["w_hh1_t"],
              params["b_ih1"], params["b_hh1"])
    out = x @ params["w_proj_t"] + params["b_proj"] + h1n
    h2n = gru(out, h2, params["w_ih2_t"], params["w_hh2_t"],
              params["b_ih2"], params["b_hh2"])
    return out + h2n, h1n, h2n


def reference_decode(x_seq, h1, h2, params):
    def step(carry, x):
        h1_, h2_ = carry
        out, h1_, h2_ = reference_forward(x, h1_, h2_, params)
        return (h1_, h2_), out

    (h1f, h2f), outs = jax.lax.scan(step, (h1, h2), x_seq)
    return outs, h1f, h2f


def init_params(key, input_size, hidden_size):
    """Deterministic init mimicking PyTorch uniform(-1/sqrt(H), 1/sqrt(H))."""
    ks = jax.random.split(key, 11)
    s = 1.0 / jnp.sqrt(hidden_size)
    u = lambda k, shape: jax.random.uniform(k, shape, jnp.float32, -s, s)
    H, I = hidden_size, input_size
    return {
        "w_ih1_t": u(ks[0], (I, 3 * H)), "w_hh1_t": u(ks[1], (H, 3 * H)),
        "b_ih1": u(ks[2], (1, 3 * H)), "b_hh1": u(ks[3], (1, 3 * H)),
        "w_ih2_t": u(ks[4], (H, 3 * H)), "w_hh2_t": u(ks[5], (H, 3 * H)),
        "b_ih2": u(ks[6], (1, 3 * H)), "b_hh2": u(ks[7], (1, 3 * H)),
        "w_proj_t": u(ks[8], (I, H)), "b_proj": u(ks[9], (1, H)),
    }


# ---------------------------------------------------------------------------
if __name__ == "__main__":
    input_size = 32
    hidden_size = 32
    batch = 8
    seq_len = 12   # deliberately NOT a multiple of time_chunk -> exercises the tail mask

    key = jax.random.PRNGKey(0)
    kp, kx, kh1, kh2, kxs = jax.random.split(key, 5)

    params = init_params(kp, input_size, hidden_size)
    x = jax.random.normal(kx, (batch, input_size), jnp.float32)
    h1 = jax.random.normal(kh1, (batch, hidden_size), jnp.float32)
    h2 = jax.random.normal(kh2, (batch, hidden_size), jnp.float32)
    x_seq = jax.random.normal(kxs, (seq_len, batch, input_size), jnp.float32)

    packed = pack_params(params, input_size, hidden_size)

    # --- single step (the module's forward) ---
    out, h1n, h2n = decoder_rnn_forward(x, h1, h2, packed)
    jax.block_until_ready((out, h1n, h2n))
    ref_out, ref_h1, ref_h2 = reference_forward(x, h1, h2, params)
    assert jnp.allclose(out, ref_out, atol=1e-4, rtol=1e-4)
    assert jnp.allclose(h1n, ref_h1, atol=1e-4, rtol=1e-4)
    assert jnp.allclose(h2n, ref_h2, atol=1e-4, rtol=1e-4)

    # --- whole sequence in one pallas_call (2 chunks of 8 steps, padded tail masked) ---
    outs, h1s, h2s = decoder_rnn_decode(x_seq, h1, h2, packed, time_chunk=8)
    jax.block_until_ready((outs, h1s, h2s))
    ref_outs, ref_h1s, ref_h2s = reference_decode(x_seq, h1, h2, params)
    assert jnp.allclose(outs, ref_outs, atol=1e-4, rtol=1e-4)
    assert jnp.allclose(h1s, ref_h1s, atol=1e-4, rtol=1e-4)
    assert jnp.allclose(h2s, ref_h2s, atol=1e-4, rtol=1e-4)

    print("KERNEL_OK")
</pallas_src>

<mosaic_0001>
module attributes {stable_mosaic.version = 11 : i64} {
  func.func @kernel(%arg0: i32, %arg1: i32, %arg2: memref<1x8x32xf32, #tpu.memory_space<vmem>>, %arg3: memref<2x8x32xf32, #tpu.memory_space<vmem>>, %arg4: memref<96x256xf32, #tpu.memory_space<vmem>>, %arg5: memref<32x128xf32, #tpu.memory_space<vmem>>, %arg6: memref<2x256xf32, #tpu.memory_space<vmem>>, %arg7: memref<8x32xf32, #tpu.memory_space<vmem>>, %arg8: memref<2x8x32xf32, #tpu.memory_space<vmem>>) attributes {dimension_semantics = [#tpu.dimension_semantics<parallel>, #tpu.dimension_semantics<arbitrary>], iteration_bounds = array<i64: 1, 1>, scalar_prefetch = 0 : i64, scratch_operands = 0 : i64, tpu.core_type = #tpu.core_type<tc>, window_params = [{transform_indices = @transform_0, window_bounds = array<i64: 1, 8, 32>}, {transform_indices = @transform_1, window_bounds = array<i64: 2, 8, 32>}, {pipeline_mode = #tpu.pipeline_mode<synchronous>, transform_indices = @transform_2, window_bounds = array<i64: 96, 256>}, {pipeline_mode = #tpu.pipeline_mode<synchronous>, transform_indices = @transform_3, window_bounds = array<i64: 32, 128>}, {pipeline_mode = #tpu.pipeline_mode<synchronous>, transform_indices = @transform_4, window_bounds = array<i64: 2, 256>}, {transform_indices = @transform_5, window_bounds = array<i64: 8, 32>}, {transform_indices = @transform_6, window_bounds = array<i64: 2, 8, 32>}]} {
    %c0_i32 = arith.constant 0 : i32
    %0 = arith.cmpi eq, %arg1, %c0_i32 : i32
    %1 = arith.extui %0 : i1 to i32
    %c0_i32_0 = arith.constant 0 : i32
    %2 = arith.cmpi ne, %1, %c0_i32_0 : i32
    scf.if %2 {
      %c0_27 = arith.constant 0 : index
      %c0_28 = arith.constant 0 : index
      %c0_29 = arith.constant 0 : index
      %66 = vector.load %arg3[%c0_27, %c0_28, %c0_29] : memref<2x8x32xf32, #tpu.memory_space<vmem>>, vector<2x8x32xf32>
      %c0_30 = arith.constant 0 : index
      %c0_31 = arith.constant 0 : index
      %c0_32 = arith.constant 0 : index
      %67 = vector.load %arg8[%c0_30, %c0_31, %c0_32] : memref<2x8x32xf32, #tpu.memory_space<vmem>>, vector<2x8x32xf32>
      tpu.vector_store %arg8[%c0_30, %c0_31, %c0_32], %66 {strides = array<i32>} : memref<2x8x32xf32, #tpu.memory_space<vmem>>, vector<2x8x32xf32>,
    } else {
    }
    %c0 = arith.constant 0 : index
    %c0_1 = arith.constant 0 : index
    %3 = vector.load %arg4[%c0, %c0_1] : memref<96x256xf32, #tpu.memory_space<vmem>>, vector<96x256xf32>
    %c0_2 = arith.constant 0 : index
    %c0_3 = arith.constant 0 : index
    %4 = vector.load %arg5[%c0_2, %c0_3] : memref<32x128xf32, #tpu.memory_space<vmem>>, vector<32x128xf32>
    %c0_4 = arith.constant 0 : index
    %c0_5 = arith.constant 0 : index
    %5 = vector.load %arg6[%c0_4, %c0_5] : memref<2x256xf32, #tpu.memory_space<vmem>>, vector<1x256xf32>
    %6 = vector.shape_cast %5 : vector<1x256xf32> to vector<1x256xf32>
    %7 = vector.broadcast %6 : vector<1x256xf32> to vector<8x256xf32>
    %c1 = arith.constant 1 : index
    %c0_6 = arith.constant 0 : index
    %8 = vector.load %arg6[%c1, %c0_6] : memref<2x256xf32, #tpu.memory_space<vmem>>, vector<1x128xf32>
    %9 = vector.shape_cast %8 : vector<1x128xf32> to vector<1x128xf32>
    %10 = vector.broadcast %9 : vector<1x128xf32> to vector<8x128xf32>
    %c0_7 = arith.constant 0 : index
    %c0_8 = arith.constant 0 : index
    %c0_9 = arith.constant 0 : index
    %11 = vector.load %arg8[%c0_7, %c0_8, %c0_9] : memref<2x8x32xf32, #tpu.memory_space<vmem>>, vector<1x8x32xf32>
    %12 = vector.shape_cast %11 : vector<1x8x32xf32> to vector<8x32xf32>
    %c1_10 = arith.constant 1 : index
    %c0_11 = arith.constant 0 : index
    %c0_12 = arith.constant 0 : index
    %13 = vector.load %arg8[%c1_10, %c0_11, %c0_12] : memref<2x8x32xf32, #tpu.memory_space<vmem>>, vector<1x8x32xf32>
    %14 = vector.shape_cast %13 : vector<1x8x32xf32> to vector<8x32xf32>
    %c0_13 = arith.constant 0 : index
    %c0_14 = arith.constant 0 : index
    %c0_15 = arith.constant 0 : index
    %15 = vector.load %arg2[%c0_13, %c0_14, %c0_15] : memref<1x8x32xf32, #tpu.memory_space<vmem>>, vector<1x8x32xf32>
    %16 = vector.shape_cast %15 : vector<1x8x32xf32> to vector<8x32xf32>
    %17 = tpu.concatenate %16, %12, %14 in 1 : vector<8x32xf32>, vector<8x32xf32>, vector<8x32xf32> -> vector<8x96xf32>
    %cst = arith.constant dense<0.000000e+00> : vector<8x256xf32>
    %18 = tpu.matmul %17, %3, %cst {dimension_numbers = #tpu.dot_dimension_numbers<[1], [0], [0], [1], [0, 0, 1, 1], [], []>} : vector<8x96xf32>, vector<96x256xf32>, vector<8x256xf32> -> vector<8x256xf32>
    %19 = arith.addf %18, %7 : vector<8x256xf32>
    %20 = vector.extract_strided_slice %19 {offsets = [0, 0], sizes = [8, 64], strides = [1, 1]} : vector<8x256xf32> to vector<8x64xf32>
    %21 = arith.negf %20 : vector<8x64xf32>
    %22 = math.exp %21 : vector<8x64xf32>
    %cst_16 = arith.constant 1.000000e+00 : f32
    %23 = vector.broadcast %cst_16 : f32 to vector<8x64xf32>
    %24 = arith.addf %23, %22 : vector<8x64xf32>
    %25 = arith.divf %23, %24 : vector<8x64xf32>
    %26 = vector.extract_strided_slice %25 {offsets = [0, 0], sizes = [8, 32], strides = [1, 1]} : vector<8x64xf32> to vector<8x32xf32>
    %27 = vector.extract_strided_slice %25 {offsets = [0, 32], sizes = [8, 32], strides = [1, 1]} : vector<8x64xf32> to vector<8x32xf32>
    %28 = vector.extract_strided_slice %19 {offsets = [0, 64], sizes = [8, 32], strides = [1, 1]} : vector<8x256xf32> to vector<8x32xf32>
    %29 = vector.extract_strided_slice %19 {offsets = [0, 96], sizes = [8, 32], strides = [1, 1]} : vector<8x256xf32> to vector<8x32xf32>
    %30 = arith.mulf %26, %29 : vector<8x32xf32>
    %31 = arith.addf %28, %30 : vector<8x32xf32>
    %32 = math.tanh %31 : vector<8x32xf32>
    %33 = arith.subf %12, %32 : vector<8x32xf32>
    %34 = arith.mulf %27, %33 : vector<8x32xf32>
    %35 = arith.addf %32, %34 : vector<8x32xf32>
    %36 = vector.extract_strided_slice %19 {offsets = [0, 128], sizes = [8, 32], strides = [1, 1]} : vector<8x256xf32> to vector<8x32xf32>
    %37 = arith.addf %36, %35 : vector<8x32xf32>
    %cst_17 = arith.constant dense<0.000000e+00> : vector<8x128xf32>
    %38 = tpu.matmul %37, %4, %cst_17 {dimension_numbers = #tpu.dot_dimension_numbers<[1], [0], [0], [1], [0, 0, 1, 1], [], []>} : vector<8x32xf32>, vector<32x128xf32>, vector<8x128xf32> -> vector<8x128xf32>
    %39 = arith.addf %38, %10 : vector<8x128xf32>
    %40 = vector.extract_strided_slice %39 {offsets = [0, 0], sizes = [8, 64], strides = [1, 1]} : vector<8x128xf32> to vector<8x64xf32>
    %41 = vector.extract_strided_slice %19 {offsets = [0, 160], sizes = [8, 64], strides = [1, 1]} : vector<8x256xf32> to vector<8x64xf32>
    %42 = arith.addf %40, %41 : vector<8x64xf32>
    %43 = arith.negf %42 : vector<8x64xf32>
    %44 = math.exp %43 : vector<8x64xf32>
    %cst_18 = arith.constant 1.000000e+00 : f32
    %45 = vector.broadcast %cst_18 : f32 to vector<8x64xf32>
    %46 = arith.addf %45, %44 : vector<8x64xf32>
    %47 = arith.divf %45, %46 : vector<8x64xf32>
    %48 = vector.extract_strided_slice %47 {offsets = [0, 0], sizes = [8, 32], strides = [1, 1]} : vector<8x64xf32> to vector<8x32xf32>
    %49 = vector.extract_strided_slice %47 {offsets = [0, 32], sizes = [8, 32], strides = [1, 1]} : vector<8x64xf32> to vector<8x32xf32>
    %50 = vector.extract_strided_slice %39 {offsets = [0, 64], sizes = [8, 32], strides = [1, 1]} : vector<8x128xf32> to vector<8x32xf32>
    %51 = vector.extract_strided_slice %19 {offsets = [0, 224], sizes = [8, 32], strides = [1, 1]} : vector<8x256xf32> to vector<8x32xf32>
    %52 = arith.mulf %48, %51 : vector<8x32xf32>
    %53 = arith.addf %50, %52 : vector<8x32xf32>
    %54 = math.tanh %53 : vector<8x32xf32>
    %55 = arith.subf %14, %54 : vector<8x32xf32>
    %56 = arith.mulf %49, %55 : vector<8x32xf32>
    %57 = arith.addf %54, %56 : vector<8x32xf32>
    %58 = arith.addf %37, %57 : vector<8x32xf32>
    %c0_19 = arith.constant 0 : index
    %c0_20 = arith.constant 0 : index
    %59 = vector.load %arg7[%c0_19, %c0_20] : memref<8x32xf32, #tpu.memory_space<vmem>>, vector<8x32xf32>
    tpu.vector_store %arg7[%c0_19, %c0_20], %58 {strides = array<i32>} : memref<8x32xf32, #tpu.memory_space<vmem>>, vector<8x32xf32>,
    %c0_21 = arith.constant 0 : index
    %c0_22 = arith.constant 0 : index
    %c0_23 = arith.constant 0 : index
    %60 = vector.load %arg8[%c0_21, %c0_22, %c0_23] : memref<2x8x32xf32, #tpu.memory_space<vmem>>, vector<1x8x32xf32>
    %61 = vector.shape_cast %60 : vector<1x8x32xf32> to vector<8x32xf32>
    %62 = vector.shape_cast %35 : vector<8x32xf32> to vector<1x8x32xf32>
    tpu.vector_store %arg8[%c0_21, %c0_22, %c0_23], %62 {strides = array<i32>} : memref<2x8x32xf32, #tpu.memory_space<vmem>>, vector<1x8x32xf32>,
    %c1_24 = arith.constant 1 : index
    %c0_25 = arith.constant 0 : index
    %c0_26 = arith.constant 0 : index
    %63 = vector.load %arg8[%c1_24, %c0_25, %c0_26] : memref<2x8x32xf32, #tpu.memory_space<vmem>>, vector<1x8x32xf32>
    %64 = vector.shape_cast %63 : vector<1x8x32xf32> to vector<8x32xf32>
    %65 = vector.shape_cast %57 : vector<8x32xf32> to vector<1x8x32xf32>
    tpu.vector_store %arg8[%c1_24, %c0_25, %c0_26], %65 {strides = array<i32>} : memref<2x8x32xf32, #tpu.memory_space<vmem>>, vector<1x8x32xf32>,
    return
  }
  func.func @transform_0(%arg0: i32, %arg1: i32) -> (i32, i32, i32) {
    %c0_i32 = arith.constant 0 : i32
    %c0_i32_0 = arith.constant 0 : i32
    return %arg1, %arg0, %c0_i32 : i32, i32, i32
  }
  func.func @transform_1(%arg0: i32, %arg1: i32) -> (i32, i32, i32) {
    %c0_i32 = arith.constant 0 : i32
    %c0_i32_0 = arith.constant 0 : i32
    %c0_i32_1 = arith.constant 0 : i32
    return %c0_i32, %arg0, %c0_i32_0 : i32, i32, i32
  }
  func.func @transform_2(%arg0: i32, %arg1: i32) -> (i32, i32) {
    %c0_i32 = arith.constant 0 : i32
    %c0_i32_0 = arith.constant 0 : i32
    %c0_i32_1 = arith.constant 0 : i32
    return %c0_i32, %c0_i32_0 : i32, i32
  }
  func.func @transform_3(%arg0: i32, %arg1: i32) -> (i32, i32) {
    %c0_i32 = arith.constant 0 : i32
    %c0_i32_0 = arith.constant 0 : i32
    %c0_i32_1 = arith.constant 0 : i32
    return %c0_i32, %c0_i32_0 : i32, i32
  }
  func.func @transform_4(%arg0: i32, %arg1: i32) -> (i32, i32) {
    %c0_i32 = arith.constant 0 : i32
    %c0_i32_0 = arith.constant 0 : i32
    %c0_i32_1 = arith.constant 0 : i32
    return %c0_i32, %c0_i32_0 : i32, i32
  }
  func.func @transform_5(%arg0: i32, %arg1: i32) -> (i32, i32) {
    %c0_i32 = arith.constant 0 : i32
    return %arg0, %arg1 : i32, i32
  }
  func.func @transform_6(%arg0: i32, %arg1: i32) -> (i32, i32, i32) {
    %c0_i32 = arith.constant 0 : i32
    %c0_i32_0 = arith.constant 0 : i32
    %c0_i32_1 = arith.constant 0 : i32
    return %c0_i32, %arg0, %c0_i32_0 : i32, i32, i32
  }
}

</mosaic_0001>

<bundles_post_ra>
// kernel: tpu_custom_call.1
= control target key start
LH: loop header
LB: loop body
LE: loop exit
PB: predicated region body
PF: predicated region fallthrough
CT: control target
= control target key end

     0   :  { %12 = vsyncpa [#allocation3], 0  ;;  %s799_s0 = inlined_call_operand.hbm [shape: f32[1,8,32], index: 0, kind: input, shape index: {}]   ;;  %s800_s1 = inlined_call_operand.hbm [shape: f32[2,8,32], index: 1, kind: input, shape index: {}]   ;;  %s801_s2 = inlined_call_operand.hbm [shape: f32[96,256], index: 2, kind: input, shape index: {}]   ;;  %s802_s3 = inlined_call_operand.hbm [shape: f32[32,128], index: 3, kind: input, shape index: {}]   ;;  %s803_s4 = inlined_call_operand.vmem [shape: f32[2,256], index: 4, kind: input, shape index: {}]   ;;  %s804_s5 = inlined_call_operand.hbm [shape: f32[8,32], index: 5, kind: output, shape index: {0}]   ;;  %s805_s6 = inlined_call_operand.hbm [shape: f32[2,8,32], index: 6, kind: output, shape index: {1}]  }
   0x1   :  { %13 = vsyncpa [#allocation6], 0 }
   0x2   :  { %14 = vsyncpa [#allocation9], 0 }
   0x3   :  { %15 = vsyncpa [#allocation4], 0 }
   0x4   :  { %16 = vsyncpa [#allocation12], 0  ;;  %s630_s21 = smov [#allocation5]   ;;  %s488_s25 = scalar_lea.hbm %s800_s1, 256 }
   0x5   :  { %s32_s22 = sshll.u32 %s630_s21, 4  ;;  %p489_p0 = scmp.ne.s32.totalorder %s800_s1, %s488_s25  ;;  %s33_s22 = int_to_ptr.vmem [resolvable:$true] %s32_s22 }
   0x6   :  { %p492_p1 = scmp.lt.u32.totalorder %s488_s25, %s800_s1 }
   0x8   :  { %p494_p2 = pnand %p492_p1, %p489_p0 }
   0xa   :  { %497 = shalt.err (!%p494_p2)
}
   0xb   :  { %s498_s30 = scalar_lea.vmem %s33_s22, 256  ;;  %p503_p4 = scmp.lt.s32.totalorder %s33_s22, %s33_s22 }
   0xc   :  { %p499_p3 = scmp.ne.s32.totalorder %s33_s22, %s498_s30  ;;  %p504_p5 = scmp.lt.s32.totalorder %s498_s30, %s498_s30 }
   0xe   :  { %p505_p6 = por %p504_p5, %p503_p4 }
  0x10   :  { %p506_p7 = pnand %p505_p6, %p499_p3 }
  0x12   :  { %509 = shalt.err (!%p506_p7)
}
  0x13   :  { %s631_s7 = smov 128   ;;  %s632_s8 = smov 8  }
  0x14   :  { %38 = dma.hbm_to_vmem [thread:$0]  %s800_s1, 256, %s33_s22, [#allocation6], %s631_s7, %s631_s7, %s632_s8  }
  0x15   :  { %s633_s11 = smov [#allocation2]   ;;  %s634_s13 = smov [#allocation7]  }
  0x16   :  { %s23_s12 = sshll.u32 %s633_s11, 4  ;;  %s44_s14 = sshll.u32 %s634_s13, 4  ;;  %s24_s12 = int_to_ptr.vmem [resolvable:$true] %s23_s12  ;;  %s45_s14 = int_to_ptr.vmem [resolvable:$true] %s44_s14 }
  0x17   :  { %s510_s17 = scalar_lea.hbm %s799_s0, 128 }
  0x18   :  { %p511_p8 = scmp.ne.s32.totalorder %s799_s0, %s510_s17  ;;  %p514_p9 = scmp.lt.u32.totalorder %s510_s17, %s799_s0 }
  0x1a   :  { %p516_p10 = pnand %p514_p9, %p511_p8 }
  0x1c   :  { %519 = shalt.err (!%p516_p10)
}
  0x1d   :  { %s520_s1 = scalar_lea.vmem %s24_s12, 128  ;;  %p525_p12 = scmp.lt.s32.totalorder %s24_s12, %s24_s12 }
  0x1e   :  { %p521_p11 = scmp.ne.s32.totalorder %s24_s12, %s520_s1  ;;  %p526_p13 = scmp.lt.s32.totalorder %s520_s1, %s520_s1 }
  0x20   :  { %p527_p0 = por %p526_p13, %p525_p12 }
  0x22   :  { %p528_p1 = pnand %p527_p0, %p521_p11 }
  0x24   :  { %531 = shalt.err (!%p528_p1)
}
  0x25   :  { %26 = dma.hbm_to_vmem [thread:$0]  %s799_s0, 128, %s24_s12, [#allocation3]  }
  0x26   :  { %s532_s26 = scalar_lea.hbm %s801_s2, 3072 }
  0x27   :  { %p533_p2 = scmp.ne.s32.totalorder %s801_s2, %s532_s26  ;;  %p536_p3 = scmp.lt.u32.totalorder %s532_s26, %s801_s2 }
  0x29   :  { %p538_p4 = pnand %p536_p3, %p533_p2 }
  0x2b   :  { %541 = shalt.err (!%p538_p4)
}
  0x2c   :  { %s542_s9 = scalar_lea.vmem %s45_s14, 3072  ;;  %p547_p6 = scmp.lt.s32.totalorder %s45_s14, %s45_s14 }
  0x2d   :  { %p543_p5 = scmp.ne.s32.totalorder %s45_s14, %s542_s9  ;;  %p548_p7 = scmp.lt.s32.totalorder %s542_s9, %s542_s9 }
  0x2f   :  { %p549_p8 = por %p548_p7, %p547_p6 }
  0x31   :  { %p550_p9 = pnand %p549_p8, %p543_p5 }
  0x33   :  { %553 = shalt.err (!%p550_p9)
}
  0x34   :  { %s635_s0 = smov 256   ;;  %s636_s10 = smov 16  }
  0x35   :  { %50 = dma.hbm_to_vmem [thread:$0]  %s801_s2, 3072, %s45_s14, [#allocation6], %s635_s0, %s635_s0, %s636_s10  }
  0x36   :  { %s637_s13 = smov [#allocation8]   ;;  %s554_s18 = scalar_lea.hbm %s802_s3, 512 }
  0x37   :  { %s56_s15 = sshll.u32 %s637_s13, 4  ;;  %p555_p10 = scmp.ne.s32.totalorder %s802_s3, %s554_s18  ;;  %s57_s15 = int_to_ptr.vmem [resolvable:$true] %s56_s15 }
  0x38   :  { %p558_p11 = scmp.lt.u32.totalorder %s554_s18, %s802_s3 }
  0x3a   :  { %p560_p12 = pnand %p558_p11, %p555_p10 }
  0x3c   :  { %563 = shalt.err (!%p560_p12)
}
  0x3d   :  { %s564_s22 = scalar_lea.vmem %s57_s15, 512  ;;  %p569_p0 = scmp.lt.s32.totalorder %s57_s15, %s57_s15 }
  0x3e   :  { %p565_p13 = scmp.ne.s32.totalorder %s57_s15, %s564_s22  ;;  %p570_p1 = scmp.lt.s32.totalorder %s564_s22, %s564_s22 }
  0x40   :  { %p571_p2 = por %p570_p1, %p569_p0 }
  0x42   :  { %p572_p3 = pnand %p571_p2, %p565_p13 }
  0x44   :  { %575 = shalt.err (!%p572_p3)
}
  0x45   :  { %62 = dma.hbm_to_vmem [thread:$0]  %s802_s3, 512, %s57_s15, [#allocation9], %s631_s7, %s631_s7, %s632_s8  }
  0x46   :  { %620 = dma.done.wait [#allocation3], 128  }
  0x47   :  { %621 = vsyncadd [#allocation3], 4294967168 }
  0x48   :  { %622 = dma.done.wait [#allocation6], 3328  }
  0x49   :  { %623 = vsyncadd [#allocation6], 4294963968 }
  0x4a   :  { %624 = dma.done.wait [#allocation9], 512  }
  0x4b   :  { %625 = vsyncadd [#allocation9], 4294966784  ;;  %vm83_vm0 = vcmask 261120   ;;  %v81_v0 = vld [vmem:[#allocation5] sm:$0xff]  ;;  %v82_v1 = vld [vmem:[#allocation5 + $0x8] sm:$0xff]  ;;  %v638_v3 = vmov 0.0   ;;  %v116_v46 = vlaneseq }
  0x4c   :  { %v87_v2 = vld [vmem:[#allocation7 + $0x8] sm:$0xff]  ;;  %215 = vmatprep.mubr.f32.mxu0 %v638_v3  ;;  %84 = vst.msk [vmem:[#allocation11] sm:$0xff] %vm83_vm0, %v81_v0  ;;  %85 = vst.msk [vmem:[#allocation11 + $0x8] sm:$0xff] %vm83_vm0, %v82_v1  ;;  %v89_v4 = vld [vmem:[#allocation7 + $0x18] sm:$0xff]  ;;  %s639_s3 = smov 32   ;;  %s640_s23 = smov 64  }
  0x4d   :  { %v86_v5 = vld [vmem:[#allocation7] sm:$0xff]  ;;  %v88_v6 = vld [vmem:[#allocation7 + $0x10] sm:$0xff]  ;;  %v430_v7 = vpack.c.bf16 %v89_v4, %v87_v2  ;;  %v91_v9 = vld [vmem:[#allocation7 + $0x28] sm:$0xff]  ;;  %vm145_vm1 = vcmask 523264   ;;  %vm147_vm2 = vcmask 785408   ;;  %v117_v47 = vshrl.u32 %v116_v46, 7 }
  0x4e   :  { %v432_v8 = vpack.c.bf16 %v88_v6, %v86_v5  ;;  %v93_v10 = vld [vmem:[#allocation7 + $0x38] sm:$0xff]  ;;  %v90_v11 = vld [vmem:[#allocation7 + $0x20] sm:$0xff]  ;;  %v92_v13 = vld [vmem:[#allocation7 + $0x30] sm:$0xff]  ;;  %v641_v6 = vmov 0.0|0.0   ;;  %s642_s26 = smov 96   ;;  %vm643_vm3 = vmmov 0  }
  0x4f   :  { %v434_v12 = vpack.c.bf16 %v93_v10, %v91_v9  ;;  %v95_v14 = vld [vmem:[#allocation7 + $0x48] sm:$0xff]  ;;  %v97_v15 = vld [vmem:[#allocation7 + $0x58] sm:$0xff]  ;;  %431 = vmatprep.subr.bf16.mxu0 %v430_v7  ;;  %v436_v16 = vpack.c.bf16 %v92_v13, %v90_v11  ;;  %v94_v18 = vld [vmem:[#allocation7 + $0x40] sm:$0xff]  ;;  %v118_v48 = vsub.s32 0, %v117_v47  ;;  %v122_v5 = vsub.s32 1, %v117_v47  ;;  %454 = vmatprep.subr.bf16.mxu1 %v641_v6  ;;  %s645_s30 = smov [#allocation10]  }
  0x50   :  { %433 = vmatpush1.bf16.msra.mxu0 %v432_v8  ;;  %v438_v17 = vpack.c.bf16 %v97_v15, %v95_v14  ;;  %v96_v19 = vld [vmem:[#allocation7 + $0x50] sm:$0xff]  ;;  %v99_v20 = vld [vmem:[#allocation7 + $0x68] sm:$0xff]  ;;  %v101_v21 = vld [vmem:[#allocation7 + $0x78] sm:$0xff]  ;;  %427 = vmatprep.mubr.msk.f32.mxu1 %vm643_vm3, %v638_v3  ;;  %s382_s9 = sshll.u32 %s645_s30, 4  ;;  %s383_s9 = int_to_ptr.vmem [resolvable:$true] %s382_s9 }
  0x51   :  { %435 = vmatprep.subr.bf16.mxu0 %v434_v12  ;;  %v440_v23 = vpack.c.bf16 %v96_v19, %v94_v18  ;;  %v442_v25 = vpack.c.bf16 %v101_v21, %v99_v20  ;;  %v98_v26 = vld [vmem:[#allocation7 + $0x60] sm:$0xff]  ;;  %v100_v27 = vld [vmem:[#allocation7 + $0x70] sm:$0xff]  ;;  %v103_v28 = vld [vmem:[#allocation7 + $0x88] sm:$0xff] }
  0x52   :  { %v105_v29 = vld [vmem:[#allocation7 + $0x98] sm:$0xff]  ;;  %v444_v30 = vpack.c.bf16 %v100_v27, %v98_v26  ;;  %v102_v32 = vld [vmem:[#allocation7 + $0x80] sm:$0xff]  ;;  %v104_v33 = vld [vmem:[#allocation7 + $0x90] sm:$0xff] }
  0x53   :  { %v738_v22 = vld [vmem:[#allocation11] sm:$0xff]  ;;  %v742_v24 = vld [vmem:[#allocation11 + $0x8] sm:$0xff]  ;;  %v446_v31 = vpack.c.bf16 %v105_v29, %v103_v28  ;;  %v109_v35 = vld [vmem:[#allocation7 + $0xb8] sm:$0xff]  ;;  %v448_v36 = vpack.c.bf16 %v104_v33, %v102_v32 }
  0x54   :  { %136 = vrot.lane.b32.xlu0 %v738_v22, %s639_s3  ;;  %437 = vmatpush1.bf16.msra.mxu0 %v436_v16  ;;  %v107_v34 = vld [vmem:[#allocation7 + $0xa8] sm:$0xff]  ;;  %v106_v38 = vld [vmem:[#allocation7 + $0xa0] sm:$0xff]  ;;  %v108_v39 = vld [vmem:[#allocation7 + $0xb0] sm:$0xff] }
  0x55   :  { %439 = vmatprep.subr.bf16.mxu0 %v438_v17  ;;  %v450_v37 = vpack.c.bf16 %v109_v35, %v107_v34  ;;  %v452_v40 = vpack.c.bf16 %v108_v39, %v106_v38  ;;  %v134_v42 = vld [vmem:[#allocation2] sm:$0xff]  ;;  %v110_v1 = vld [vmem:[#allocation8] sm:$0xff]  ;;  %v112_v4 = vld [vmem:[#allocation8 + $0x10] sm:$0xff] }
  0x56   :  { %v114_v49 = vld [vmem:[%s803_s4] ss:$2 sm:$0x3]  ;;  %v113_v8 = vld [vmem:[#allocation8 + $0x18] sm:$0xff]  ;;  %v409_v18 = vld [vmem:[%s803_s4 + $0x1] ss:$0 sm:$0xff] }
  0x57   :  { %v119_v50 = vrot.slane %v114_v49, %v118_v48  ;;  %v111_v2 = vld [vmem:[#allocation8 + $0x8] sm:$0xff]  ;;  %v458_v9 = vpack.c.bf16 %v113_v8, %v112_v4  ;;  %v123_v11 = vrot.slane %v114_v49, %v122_v5  ;;  %s644_s4 = smov [#allocation11]  }
  0x58   :  { %140 = vrot.lane.b32.xlu0 %v742_v24, %s640_s23  ;;  %441 = vmatpush1.bf16.msra.mxu0 %v440_v23  ;;  %v455_v7 = vpack.c.bf16 %v111_v2, %v110_v1  ;;  %s391_s29 = sshll.u32 %s644_s4, 4  ;;  %s392_s29 = int_to_ptr.vmem [resolvable:$true] %s391_s29 }
  0x59   :  { %443 = vmatprep.subr.bf16.mxu0 %v442_v25  ;;  %s576_s0 = scalar_lea.vmem %s392_s29, 256  ;;  %p581_p5 = scmp.lt.s32.totalorder %s392_s29, %s392_s29 }
  0x5a   :  { %456 = vmatpush3.bf16.msra.mxu1 %v455_v7  ;;  %p577_p4 = scmp.ne.s32.totalorder %s392_s29, %s576_s0  ;;  %p582_p6 = scmp.lt.s32.totalorder %s576_s0, %s576_s0 }
  0x5b   :  { %457 = vmatprep.subr.bf16.mxu1 %v641_v6 }
  0x5c   :  { %445 = vmatpush1.bf16.msra.mxu0 %v444_v30  ;;  %p583_p7 = por %p582_p6, %p581_p5 }
  0x5d   :  { %447 = vmatprep.subr.bf16.mxu0 %v446_v31 }
  0x5e   :  { %459 = vmatpush3.bf16.msra.mxu1 %v458_v9  ;;  %p584_p8 = pnand %p583_p7, %p577_p4 }
  0x60   :  { %449 = vmatpush1.bf16.msra.mxu0 %v448_v36 }
  0x61   :  { %451 = vmatprep.subr.bf16.mxu0 %v450_v37 }
  0x64   :  { %453 = vmatpush1.bf16.msra.mxu0 %v452_v40 }
  0xc6   :  { %v137_v41 = vpop.permute.xlu0 %136 }
  0xc7   :  { %v144_v43 = vsel %vm83_vm0, %v134_v42, %v137_v41 }
  0xca   :  { %v141_v44 = vpop.permute.xlu0 %140 }
  0xcb   :  { %v146_v45 = vsel %vm145_vm1, %v144_v43, %v141_v44 }
  0xcc   :  { %410 = vmatmul.mubr.msk.f32.vlgmr.msra.gmra.mrb[0].mxu0 %vm147_vm2, %v146_v45 }
 0x19f   :  { %v217_v51 = vpop.f32.mrb[0].mxu0 }
 0x1a0   :  { %v218_v52 = vadd.f32 %v217_v51, %v119_v50  ;;  %v219_v53 = vpop.f32.mrb[1].mxu0 }
 0x1a1   :  { %v220_v13 = vadd.f32 %v219_v53, %v123_v11 }
 0x1a2   :  { %229 = vrot.lane.b32.xlu1 %v218_v52, %s639_s3  ;;  %v411_v54 = vmul.f32 -1.442695, %v218_v52 }
 0x1a4   :  { %476 = vpow2.f32 %v411_v54 }
 0x1ae   :  { %v477_v55 = vpop.eup %476 }
 0x1af   :  { %v225_v56 = vadd.f32 1.0, %v477_v55 }
 0x1b1   :  { %478 = vrcp.f32 %v225_v56 }
 0x1bb   :  { %v479_v57 = vpop.eup %478 }
 0x214   :  { %v230_v58 = vpop.permute.xlu1 %229 }
 0x215   :  { %v232_v59 = vmul.f32 %v479_v57, %v230_v58 }
 0x217   :  { %234 = vrot.lane.b32.xlu1 %v232_v59, %s640_s23 }
 0x289   :  { %v235_v60 = vpop.permute.xlu1 %234 }
 0x28a   :  { %v237_v61 = vadd.f32 %v235_v60, %v218_v52 }
 0x28c   :  { %480 = vtanh.f32 %v237_v61 }
 0x296   :  { %v481_v62 = vpop.eup %480 }
 0x297   :  { %240 = vrot.lane.b32.xlu0 %v481_v62, %s640_s23 }
 0x309   :  { %v241_v63 = vpop.permute.xlu0 %240 }
 0x30a   :  { %v243_v0 = vsub.f32 %v738_v22, %v241_v63 }
 0x30c   :  { %245 = vrot.lane.b32.xlu1 %v243_v0, %s639_s3 }
 0x37e   :  { %v246_v10 = vpop.permute.xlu1 %245 }
 0x37f   :  { %v248_v12 = vmul.f32 %v479_v57, %v246_v10 }
 0x381   :  { %250 = vrot.lane.b32.xlu0 %v248_v12, %s639_s3 }
 0x385   :  { %333 = vrot.lane.b32.xlu0 %v220_v13, %s642_s26 }
 0x3f3   :  { %v251_v14 = vpop.permute.xlu0 %250 }
 0x3f4   :  { %v253_v15 = vadd.f32 %v481_v62, %v251_v14 }
 0x3f6   :  { %255 = vrot.lane.b32.xlu1 %v253_v15, %s640_s23 }
 0x3f7   :  { %v334_v3 = vpop.permute.xlu0 %333 }
 0x3fa   :  { %343 = vrot.lane.b32.xlu1 %v220_v13, %s639_s3 }
 0x468   :  { %v256_v16 = vpop.permute.xlu1 %255 }
 0x469   :  { %v258_v17 = vadd.f32 %v256_v16, %v220_v13  ;;  %374 = vst.msk [vmem:[#allocation11] sm:$0xff] %vm83_vm0, %v256_v16 }
 0x46b   :  { %428 = vmatmul.mubr.msk.f32.vlgmr.msra.gmra.mrb[0].mxu1 %vm83_vm0, %v258_v17 }
 0x46c   :  { %v344_v28 = vpop.permute.xlu1 %343 }
 0x53e   :  { %v328_v19 = vpop.f32.mrb[0].mxu1 }
 0x53f   :  { %v329_v20 = vadd.f32 %v409_v18, %v328_v19  ;;  %v429_v21 = vpop.f32.mrb[1].mxu1 }
 0x541   :  { %v336_v22 = vadd.f32 %v334_v3, %v329_v20 }
 0x543   :  { %v413_v23 = vmul.f32 -1.442695, %v336_v22 }
 0x545   :  { %482 = vpow2.f32 %v413_v23 }
 0x54f   :  { %v483_v25 = vpop.eup %482 }
 0x550   :  { %v340_v26 = vadd.f32 1.0, %v483_v25 }
 0x552   :  { %484 = vrcp.f32 %v340_v26 }
 0x55c   :  { %v485_v27 = vpop.eup %484 }
 0x55d   :  { %v346_v29 = vmul.f32 %v485_v27, %v344_v28 }
 0x55f   :  { %348 = vrot.lane.b32.xlu0 %v346_v29, %s640_s23 }
 0x5d1   :  { %v349_v30 = vpop.permute.xlu0 %348 }
 0x5d2   :  { %v351_v31 = vadd.f32 %v349_v30, %v329_v20 }
 0x5d4   :  { %486 = vtanh.f32 %v351_v31 }
 0x5de   :  { %v487_v32 = vpop.eup %486 }
 0x5df   :  { %354 = vrot.lane.b32.xlu1 %v487_v32, %s640_s23 }
 0x651   :  { %v355_v33 = vpop.permute.xlu1 %354 }
 0x652   :  { %v357_v34 = vsub.f32 %v742_v24, %v355_v33 }
 0x654   :  { %359 = vrot.lane.b32.xlu0 %v357_v34, %s639_s3 }
 0x6c6   :  { %v360_v35 = vpop.permute.xlu0 %359 }
 0x6c7   :  { %v362_v36 = vmul.f32 %v485_v27, %v360_v35 }
 0x6c9   :  { %364 = vrot.lane.b32.xlu1 %v362_v36, %s639_s3 }
 0x73b   :  { %v365_v37 = vpop.permute.xlu1 %364 }
 0x73c   :  { %v367_v38 = vadd.f32 %v487_v32, %v365_v37 }
 0x73e   :  { %369 = vrot.lane.b32.xlu0 %v367_v38, %s640_s23 }
 0x7b0   :  { %v370_v39 = vpop.permute.xlu0 %369 }
 0x7b1   :  { %v372_v40 = vadd.f32 %v370_v39, %v258_v17  ;;  %375 = vst.msk [vmem:[#allocation11 + $0x8] sm:$0xff] %vm83_vm0, %v370_v39 }
 0x7b2   :  { %587 = shalt.err (!%p584_p8)
}
 0x7b3   :  { %s588_s12 = scalar_lea.hbm %s805_s6, 256 }
 0x7b4   :  { %p589_p9 = scmp.ne.s32.totalorder %s805_s6, %s588_s12  ;;  %p592_p10 = scmp.lt.u32.totalorder %s588_s12, %s805_s6 }
 0x7b6   :  { %p594_p11 = pnand %p592_p10, %p589_p9 }
 0x7b8   :  { %597 = shalt.err (!%p594_p11)
}
 0x7b9   :  { %397 = dma.vmem_to_hbm [thread:$0]  %s392_s29, 256, %s805_s6, [#allocation12], %s631_s7, %s631_s7, %s632_s8   ;;  %373 = vst.msk [vmem:[#allocation10] sm:$0xff] %vm83_vm0, %v372_v40 }
 0x7ba   :  { %s598_s20 = scalar_lea.vmem %s383_s9, 128  ;;  %p603_p13 = scmp.lt.s32.totalorder %s383_s9, %s383_s9 }
 0x7bb   :  { %p599_p12 = scmp.ne.s32.totalorder %s383_s9, %s598_s20  ;;  %p604_p0 = scmp.lt.s32.totalorder %s598_s20, %s598_s20 }
 0x7bd   :  { %p605_p1 = por %p604_p0, %p603_p13 }
 0x7bf   :  { %p606_p2 = pnand %p605_p1, %p599_p12 }
 0x7c1   :  { %609 = shalt.err (!%p606_p2)
}
 0x7c2   :  { %s610_s22 = scalar_lea.hbm %s804_s5, 128 }
 0x7c3   :  { %p611_p3 = scmp.ne.s32.totalorder %s804_s5, %s610_s22  ;;  %p614_p4 = scmp.lt.u32.totalorder %s610_s22, %s804_s5 }
 0x7c5   :  { %p616_p5 = pnand %p614_p4, %p611_p3 }
 0x7c7   :  { %619 = shalt.err (!%p616_p5)
}
 0x7c8   :  { %385 = dma.vmem_to_hbm [thread:$0]  %s383_s9, 128, %s804_s5, [#allocation4]  }
 0x7c9   :  { %626 = dma.done.wait [#allocation4], 128  }
 0x7ca   :  { %627 = vsyncadd [#allocation4], 4294967168 }
 0x7cb   :  { %628 = dma.done.wait [#allocation12], 256  }
 0x7cc   :  { %629 = vsyncadd [#allocation12], 4294967040 }
 0x7cd   :  { %404 = vsyncpa [#allocation3], 1 }
 0x7ce   :  { %405 = vsyncpa [#allocation6], 1 }
 0x7cf   :  { %406 = vsyncpa [#allocation9], 1 }
 0x7d0   :  { %407 = vsyncpa [#allocation4], 1 }
 0x7d1   :  { %408 = vsyncpa [#allocation12], 1 }

</bundles_post_ra>
